<compile_context>
chip_gen: v7x
topology: tpu7x:2x2x1
jax: 0.10.0
libtpu: 0.0.40
codegen_flags: <defaults>
</compile_context>

<pallas_src>
import functools

import numpy as np
import jax
import jax.numpy as jnp
from jax import lax
from jax.experimental import pallas as pl
from jax.experimental.pallas import tpu as pltpu


# -----------------------------------------------------------------------------
# Pallas kernel: per (row-block, col-block) tile
#   bf16 Gram tile (MXU, f32 accum) -> guarded diagonal/pad mask -> online LSE
#   -> finalize per-row logsumexp on the last column step.
# -----------------------------------------------------------------------------
def _howeng_lse_kernel(q_ref, k_ref, o_ref, m_sc, l_sc, *, n_valid):
    """q_ref: (TM, D) bf16 normalized rows with 1/T folded in.
       k_ref: (D, TN) bf16 normalized rows, pre-transposed.
       o_ref: (TM, 1) f32 per-row logsumexp over all columns != row."""
    i = pl.program_id(0)              # row block     ("parallel")
    j = pl.program_id(1)              # column block  (reduction, "arbitrary")
    tm = q_ref.shape[0]
    tn = k_ref.shape[1]

    @pl.when(j == 0)
    def _init():
        m_sc[...] = jnp.full_like(m_sc, -jnp.inf)
        l_sc[...] = jnp.zeros_like(l_sc)

    # Gram tile on the MXU: bf16 operands, f32 accumulation.  No normalization,
    # cast, or temperature multiply in-kernel (all folded into the streams).
    s = jnp.dot(q_ref[...], k_ref[...], preferred_element_type=jnp.float32)   # (TM, TN)

    # Mask the global diagonal and padded columns, but only on tiles that can
    # actually contain them (scalar guard: ~all tiles skip the iota/cmp/select).
    row0 = i * tm
    col0 = j * tn
    diag_hit = jnp.logical_and(row0 < col0 + tn, col0 < row0 + tm)
    pad_hit = (col0 + tn) > n_valid            # only possible on the last column tile

    def _mask(t):
        row_g = row0 + lax.broadcasted_iota(jnp.int32, (tm, tn), 0)
        col_g = col0 + lax.broadcasted_iota(jnp.int32, (tm, tn), 1)
        bad = jnp.logical_or(row_g == col_g, col_g >= n_valid)
        return jnp.where(bad, jnp.float32(-1e30), t)

    s = lax.cond(jnp.logical_or(diag_hit, pad_hit), _mask, lambda t: t, s)

    # Online (flash-style) logsumexp over column blocks.
    m_prev = m_sc[...]
    m_new = jnp.maximum(m_prev, jnp.max(s, axis=1, keepdims=True))
    l_sc[...] = (jnp.exp(m_prev - m_new) * l_sc[...]
                 + jnp.sum(jnp.exp(s - m_new), axis=1, keepdims=True))
    m_sc[...] = m_new

    @pl.when(j == pl.num_programs(1) - 1)
    def _finalize():
        o_ref[...] = m_sc[...] + jnp.log(l_sc[...])


# -----------------------------------------------------------------------------
# Wrapper
# -----------------------------------------------------------------------------
def _round_up(x, m):
    return ((x + m - 1) // m) * m


def _choose_tiles(n):
    """Fixed MXU-friendly tiles + padding (no divisor search).

    Defaults TM=256 / TN=512: keeps >=2 row blocks for v7x's two TensorCores
    for any N >= 512 and keeps double-buffered bf16 tiles small.  For small N
    the tiles shrink instead of over-padding.  (v6e with 128 MiB VMEM could
    raise TM to 512 for moderate D to raise key-stream arithmetic intensity.)
    """
    tm_max, tn_max = 256, 512
    if n >= tn_max:
        return tm_max, tn_max
    tn = _round_up(n, 128)                    # 128 .. 512, lane-aligned
    tm = tn // 2 if tn >= 256 else tn         # >=2 row blocks when N allows
    return tm, tn


@functools.partial(jax.jit, static_argnames=("batch_size", "views", "temperature"))
def howeng_loss(z_i, z_j, z_k, *, batch_size, views=4, temperature=0.5):
    """JAX/Pallas equivalent of Howeng_Loss(batch_size, views, temperature).forward."""
    B = int(batch_size)
    N = int(views) * B
    # The original forward is only shape-consistent under this configuration.
    assert views == 4 and B % 3 == 0, "Howeng_Loss requires views == 4 and batch_size % 3 == 0"
    assert z_i.shape == z_j.shape == z_k.shape and z_i.shape[0] == N // 3
    inv_temp = 1.0 / float(temperature)

    z = jnp.concatenate([z_i, z_j, z_k], axis=0).astype(jnp.float32)          # (N, D)
    D = z.shape[1]

    # F.normalize(x, dim=1, eps=1e-12) == x * rsqrt(max(||x||^2, eps^2)); ONCE, in f32.
    zn = z * lax.rsqrt(jnp.maximum(jnp.sum(z * z, axis=1, keepdims=True),
                                   jnp.float32(1e-24)))

    # Target (label-0) logit per row: cosine with partner row p(r).  Tiny O(N*D)
    # fused XLA op -> no third VMEM stream / finalize work inside the kernel.
    zn_perm = jnp.concatenate(
        [zn[B:2 * B], zn[0:B], zn[0:B],
         jnp.broadcast_to(zn[0:1], (N - 3 * B, D))], axis=0)                  # (N, D)
    target = jnp.sum(zn * zn_perm, axis=1) * jnp.float32(inv_temp)            # (N,)

    # bf16 streams: 1/T folded into the query side (f32 scale before the cast);
    # key matrix pre-transposed to (D, N) so the MXU sees a standard contraction.
    q_bf = (zn * jnp.float32(inv_temp)).astype(jnp.bfloat16)                  # (N, D)
    k_bf = zn.astype(jnp.bfloat16).T                                          # (D, N)

    TM, TN = _choose_tiles(N)
    n_rows = _round_up(N, TM)
    n_cols = _round_up(N, TN)
    q_bf = jnp.pad(q_bf, ((0, n_rows - N), (0, 0)))   # zero rows  (dropped in the sum)
    k_bf = jnp.pad(k_bf, ((0, 0), (0, n_cols - N)))   # zero cols  (masked in-kernel)
    grid = (n_rows // TM, n_cols // TN)

    # VMEM budget from actual tile sizes (double-buffered bf16 streams + f32 tile
    # temporaries), clamped to fit v7x's 64 MiB physical VMEM with headroom.
    vmem_bytes = (2 * TM * D * 2        # q, double-buffered bf16
                  + 2 * D * TN * 2      # k, double-buffered bf16
                  + 4 * TM * 4          # output + (m, l) scratch
                  + 6 * TM * TN * 4)    # s / exp temporaries & spill headroom
    vmem_limit = int(min(max(2 * vmem_bytes, 32 * 1024 * 1024), 56 * 1024 * 1024))

    kernel = functools.partial(_howeng_lse_kernel, n_valid=N)

    per_row_lse = pl.pallas_call(
        kernel,
        out_shape=jax.ShapeDtypeStruct((n_rows, 1), jnp.float32),
        grid_spec=pltpu.PrefetchScalarGridSpec(
            num_scalar_prefetch=0,
            grid=grid,
            in_specs=[
                pl.BlockSpec((TM, D), lambda i, j: (i, 0)),   # query rows (bf16)
                pl.BlockSpec((D, TN), lambda i, j: (0, j)),   # key cols (bf16, streamed)
            ],
            out_specs=pl.BlockSpec((TM, 1), lambda i, j: (i, 0)),
            scratch_shapes=[
                pltpu.VMEM((TM, 1), jnp.float32),   # running max m
                pltpu.VMEM((TM, 1), jnp.float32),   # running sum-of-exp l
            ],
        ),
        compiler_params=pltpu.CompilerParams(
            dimension_semantics=("parallel", "arbitrary"),
            vmem_limit_bytes=vmem_limit,
        ),
    )(q_bf, k_bf)

    lse = per_row_lse[:N, 0]
    # Per-row cross-entropy with labels == 0: lse - target; mean over N rows.
    return jnp.sum(lse - target) / jnp.float32(N)


# -----------------------------------------------------------------------------
# NumPy reference that mirrors the PyTorch code verbatim (mask + fancy indexing)
# -----------------------------------------------------------------------------
def _mask_correlated_samples(N, B):
    mask = np.ones((N, N), dtype=bool)
    for i in range(N):
        if i + B < N:
            mask[i, i + B] = False
            mask[i + B, i] = False
        if i + 2 * B < N:
            mask[i, i + 2 * B] = False
            mask[i + 2 * B, i] = False
        # the (i - B > N) / (i - 2B > N) branches in the original code never fire
    mask[:, -B:] = True
    mask[-B:, :] = True
    np.fill_diagonal(mask, False)
    return mask


def _reference_loss_numpy(z_i, z_j, z_k, B, views, T):
    N = views * B

    def normalize(x):
        n = np.linalg.norm(x, axis=1, keepdims=True)
        return x / np.maximum(n, 1e-12)

    z = np.concatenate([normalize(z_i), normalize(z_j), normalize(z_k)],
                       axis=0).astype(np.float64)
    sim = (z @ z.T) / T

    mask = _mask_correlated_samples(N, B)
    m1 = mask.copy(); np.fill_diagonal(m1, True)
    positives = sim[~m1].reshape(B * (views - 1), 2)
    m0 = mask.copy(); np.fill_diagonal(m0, False)
    negatives = sim[m0]
    neg_front = negatives[: B * (views - 1) * (N - 1 - 2)].reshape(B * (views - 1), N - 3)
    neg_back = negatives[-B * (N - 1):].reshape(N - B * (views - 1), N - 1)

    logits = np.concatenate([np.concatenate([positives, neg_front], axis=1), neg_back], axis=0)
    # CrossEntropyLoss(reduction='sum') with labels == 0
    mx = logits.max(axis=1, keepdims=True)
    lse = mx[:, 0] + np.log(np.exp(logits - mx).sum(axis=1))
    return float(np.sum(lse - logits[:, 0]) / N)


# -----------------------------------------------------------------------------
if __name__ == "__main__":
    # Config under which the original forward is shape-consistent:
    #   views = 4, batch_size divisible by 3, per-view rows S = N / 3.
    batch_size, views, temperature = 6, 4, 0.5
    N = views * batch_size        # 24
    S = N // 3                    # 8 rows per input tensor
    D = 32                        # feature dim

    key = jax.random.PRNGKey(0)
    k1, k2, k3 = jax.random.split(key, 3)
    z_i = jax.random.normal(k1, (S, D), dtype=jnp.float32)
    z_j = jax.random.normal(k2, (S, D), dtype=jnp.float32)
    z_k = jax.random.normal(k3, (S, D), dtype=jnp.float32)

    loss = howeng_loss(z_i, z_j, z_k, batch_size=batch_size, views=views,
                       temperature=temperature)
    loss = jax.block_until_ready(loss)

    ref = _reference_loss_numpy(np.asarray(z_i), np.asarray(z_j), np.asarray(z_k),
                                batch_size, views, temperature)
    # bf16 MXU operands perturb the logits at the ~1e-3 level; f32 accumulation
    # keeps the loss within ~0.5% of the f64 reference.
    np.testing.assert_allclose(float(loss), ref, rtol=2e-2, atol=1e-2)

    print("KERNEL_OK")
</pallas_src>

<mosaic_0001>
module attributes {stable_mosaic.version = 11 : i64} {
  func.func @_howeng_lse_kernel(%arg0: i32, %arg1: i32, %arg2: memref<128x32xbf16, #tpu.memory_space<vmem>>, %arg3: memref<32x128xbf16, #tpu.memory_space<vmem>>, %arg4: memref<128x1xf32, #tpu.memory_space<vmem>>, %arg5: memref<128x1xf32, #tpu.memory_space<vmem>>, %arg6: memref<128x1xf32, #tpu.memory_space<vmem>>) attributes {dimension_semantics = [#tpu.dimension_semantics<parallel>, #tpu.dimension_semantics<arbitrary>], iteration_bounds = array<i64: 1, 1>, scalar_prefetch = 0 : i64, scratch_operands = 2 : i64, tpu.core_type = #tpu.core_type<tc>, window_params = [{transform_indices = @transform_0, window_bounds = array<i64: 128, 32>}, {transform_indices = @transform_1, window_bounds = array<i64: 32, 128>}, {transform_indices = @transform_2, window_bounds = array<i64: 128, 1>}]} {
    %c0_i32 = arith.constant 0 : i32
    %0 = arith.cmpi eq, %arg1, %c0_i32 : i32
    %1 = arith.extui %0 : i1 to i32
    %c0_i32_0 = arith.constant 0 : i32
    %2 = arith.cmpi ne, %1, %c0_i32_0 : i32
    scf.if %2 {
      %cst_21 = arith.constant 0xFF800000 : f32
      %38 = vector.broadcast %cst_21 : f32 to vector<128x1xf32>
      %c0_22 = arith.constant 0 : index
      %c0_23 = arith.constant 0 : index
      %39 = vector.load %arg5[%c0_22, %c0_23] : memref<128x1xf32, #tpu.memory_space<vmem>>, vector<128x1xf32>
      tpu.vector_store %arg5[%c0_22, %c0_23], %38 {strides = array<i32>} : memref<128x1xf32, #tpu.memory_space<vmem>>, vector<128x1xf32>,
      %cst_24 = arith.constant 0.000000e+00 : f32
      %40 = vector.broadcast %cst_24 : f32 to vector<128x1xf32>
      %c0_25 = arith.constant 0 : index
      %c0_26 = arith.constant 0 : index
      %41 = vector.load %arg6[%c0_25, %c0_26] : memref<128x1xf32, #tpu.memory_space<vmem>>, vector<128x1xf32>
      tpu.vector_store %arg6[%c0_25, %c0_26], %40 {strides = array<i32>} : memref<128x1xf32, #tpu.memory_space<vmem>>, vector<128x1xf32>,
    } else {
    }
    %c0 = arith.constant 0 : index
    %c0_1 = arith.constant 0 : index
    %3 = vector.load %arg2[%c0, %c0_1] : memref<128x32xbf16, #tpu.memory_space<vmem>>, vector<128x32xbf16>
    %c0_2 = arith.constant 0 : index
    %c0_3 = arith.constant 0 : index
    %4 = vector.load %arg3[%c0_2, %c0_3] : memref<32x128xbf16, #tpu.memory_space<vmem>>, vector<32x128xbf16>
    %cst = arith.constant dense<0.000000e+00> : vector<128x128xf32>
    %5 = tpu.matmul %3, %4, %cst {dimension_numbers = #tpu.dot_dimension_numbers<[1], [0], [0], [1], [0, 0, 1, 1], [], []>} : vector<128x32xbf16>, vector<32x128xbf16>, vector<128x128xf32> -> vector<128x128xf32>
    %c128_i32 = arith.constant 128 : i32
    %6 = arith.muli %arg0, %c128_i32 : i32
    %c128_i32_4 = arith.constant 128 : i32
    %7 = arith.muli %arg1, %c128_i32_4 : i32
    %c128_i32_5 = arith.constant 128 : i32
    %8 = arith.addi %7, %c128_i32_5 : i32
    %9 = arith.cmpi slt, %6, %8 : i32
    %c128_i32_6 = arith.constant 128 : i32
    %10 = arith.addi %6, %c128_i32_6 : i32
    %11 = arith.cmpi slt, %7, %10 : i32
    %12 = arith.andi %9, %11 : i1
    %c128_i32_7 = arith.constant 128 : i32
    %13 = arith.addi %7, %c128_i32_7 : i32
    %c24_i32 = arith.constant 24 : i32
    %14 = arith.cmpi sgt, %13, %c24_i32 : i32
    %15 = arith.ori %12, %14 : i1
    %16 = arith.extui %15 : i1 to i32
    %c0_i32_8 = arith.constant 0 : i32
    %17 = arith.cmpi ne, %16, %c0_i32_8 : i32
    %18 = scf.if %17 -> (vector<128x128xf32>) {
      %38 = tpu.iota {dimensions = array<i32: 0>} : vector<128x128xi32>
      %39 = vector.broadcast %6 : i32 to vector<128x128xi32>
      %40 = arith.addi %39, %38 : vector<128x128xi32>
      %41 = tpu.iota {dimensions = array<i32: 1>} : vector<128x128xi32>
      %42 = vector.broadcast %7 : i32 to vector<128x128xi32>
      %43 = arith.addi %42, %41 : vector<128x128xi32>
      %44 = arith.cmpi eq, %40, %43 : vector<128x128xi32>
      %c24_i32_21 = arith.constant 24 : i32
      %45 = vector.broadcast %c24_i32_21 : i32 to vector<128x128xi32>
      %46 = arith.cmpi sge, %43, %45 : vector<128x128xi32>
      %47 = arith.ori %44, %46 : vector<128x128xi1>
      %cst_22 = arith.constant -1.000000e+30 : f32
      %48 = vector.broadcast %cst_22 : f32 to vector<128x128xf32>
      %49 = arith.select %47, %48, %5 : vector<128x128xi1>, vector<128x128xf32>
      scf.yield %49 : vector<128x128xf32>
    } else {
      scf.yield %5 : vector<128x128xf32>
    }
    %c0_9 = arith.constant 0 : index
    %c0_10 = arith.constant 0 : index
    %19 = vector.load %arg5[%c0_9, %c0_10] : memref<128x1xf32, #tpu.memory_space<vmem>>, vector<128x1xf32>
    %cst_11 = arith.constant dense<0xFF800000> : vector<128xf32>
    %20 = vector.multi_reduction <maximumf>, %18, %cst_11 [1] : vector<128x128xf32> to vector<128xf32>
    %21 = vector.shape_cast %20 : vector<128xf32> to vector<128x1xf32>
    %22 = arith.maximumf %19, %21 : vector<128x1xf32>
    %23 = arith.subf %19, %22 : vector<128x1xf32>
    %24 = math.exp %23 : vector<128x1xf32>
    %c0_12 = arith.constant 0 : index
    %c0_13 = arith.constant 0 : index
    %25 = vector.load %arg6[%c0_12, %c0_13] : memref<128x1xf32, #tpu.memory_space<vmem>>, vector<128x1xf32>
    %26 = arith.mulf %24, %25 : vector<128x1xf32>
    %27 = vector.broadcast %22 : vector<128x1xf32> to vector<128x128xf32>
    %28 = arith.subf %18, %27 : vector<128x128xf32>
    %29 = math.exp %28 : vector<128x128xf32>
    %cst_14 = arith.constant dense<0.000000e+00> : vector<128xf32>
    %30 = vector.multi_reduction <add>, %29, %cst_14 [1] : vector<128x128xf32> to vector<128xf32>
    %31 = vector.shape_cast %30 : vector<128xf32> to vector<128x1xf32>
    %32 = arith.addf %26, %31 : vector<128x1xf32>
    %c0_15 = arith.constant 0 : index
    %c0_16 = arith.constant 0 : index
    %33 = vector.load %arg6[%c0_15, %c0_16] : memref<128x1xf32, #tpu.memory_space<vmem>>, vector<128x1xf32>
    tpu.vector_store %arg6[%c0_15, %c0_16], %32 {strides = array<i32>} : memref<128x1xf32, #tpu.memory_space<vmem>>, vector<128x1xf32>,
    %c0_17 = arith.constant 0 : index
    %c0_18 = arith.constant 0 : index
    %34 = vector.load %arg5[%c0_17, %c0_18] : memref<128x1xf32, #tpu.memory_space<vmem>>, vector<128x1xf32>
    tpu.vector_store %arg5[%c0_17, %c0_18], %22 {strides = array<i32>} : memref<128x1xf32, #tpu.memory_space<vmem>>, vector<128x1xf32>,
    %c0_i32_19 = arith.constant 0 : i32
    %35 = arith.cmpi eq, %arg1, %c0_i32_19 : i32
    %36 = arith.extui %35 : i1 to i32
    %c0_i32_20 = arith.constant 0 : i32
    %37 = arith.cmpi ne, %36, %c0_i32_20 : i32
    scf.if %37 {
      %c0_21 = arith.constant 0 : index
      %c0_22 = arith.constant 0 : index
      %38 = vector.load %arg5[%c0_21, %c0_22] : memref<128x1xf32, #tpu.memory_space<vmem>>, vector<128x1xf32>
      %c0_23 = arith.constant 0 : index
      %c0_24 = arith.constant 0 : index
      %39 = vector.load %arg6[%c0_23, %c0_24] : memref<128x1xf32, #tpu.memory_space<vmem>>, vector<128x1xf32>
      %40 = math.log %39 : vector<128x1xf32>
      %41 = arith.addf %38, %40 : vector<128x1xf32>
      %c0_25 = arith.constant 0 : index
      %c0_26 = arith.constant 0 : index
      %42 = vector.load %arg4[%c0_25, %c0_26] : memref<128x1xf32, #tpu.memory_space<vmem>>, vector<128x1xf32>
      tpu.vector_store %arg4[%c0_25, %c0_26], %41 {strides = array<i32>} : memref<128x1xf32, #tpu.memory_space<vmem>>, vector<128x1xf32>,
    } else {
    }
    return
  }
  func.func @transform_0(%arg0: i32, %arg1: i32) -> (i32, i32) {
    %c0_i32 = arith.constant 0 : i32
    %c0_i32_0 = arith.constant 0 : i32
    return %arg0, %c0_i32 : i32, i32
  }
  func.func @transform_1(%arg0: i32, %arg1: i32) -> (i32, i32) {
    %c0_i32 = arith.constant 0 : i32
    %c0_i32_0 = arith.constant 0 : i32
    return %c0_i32, %arg1 : i32, i32
  }
  func.func @transform_2(%arg0: i32, %arg1: i32) -> (i32, i32) {
    %c0_i32 = arith.constant 0 : i32
    %c0_i32_0 = arith.constant 0 : i32
    return %arg0, %c0_i32 : i32, i32
  }
}

</mosaic_0001>

<bundles_post_ra>
// kernel: howeng_loss.1
= control target key start
LH: loop header
LB: loop body
LE: loop exit
PB: predicated region body
PF: predicated region fallthrough
CT: control target
= control target key end

     0   :  { %vm121_vm0 = vcmask 261120   ;;  %vm16_vm1 = vcmask 7168   ;;  %v997_v10 = vmov -inf   ;;  %v256_v11 = vlaneseq  ;;  %s1521_s1 = inlined_call_operand.vmem [shape: bf16[32,128], index: 1, kind: input, shape index: {}]   ;;  %s1522_s0 = inlined_call_operand.vmem [shape: bf16[128,32], index: 0, kind: input, shape index: {}]   ;;  %s1523_s2 = inlined_call_operand.vmem [shape: f32[128,1], index: 2, kind: output, shape index: {}]  }
   0x1   :  { %v891_v0 = vld [vmem:[%s1521_s1] sm:$0xff]   ;;  %v892_v1 = vld [vmem:[%s1521_s1 + $0x8] sm:$0xff]   ;;  %v897_v6 = vld [vmem:[%s1522_s0 + $0x10] sm:$0xff]   ;;  %27 = vst.msk [vmem:[#allocation2 + $0x50] sm:$0xff] %vm16_vm1, %v997_v10  ;;  %v998_v57 = vmov 0   ;;  %v999_v62 = vmov 0.0  }
   0x2   :  { %862 = vmatprep.subr.bf16.mxu0 %v891_v0  ;;  %882 = vmatprep.subr.bf16.mxu1 %v891_v0  ;;  %v893_v2 = vld [vmem:[%s1522_s0] sm:$0xff]   ;;  %v895_v4 = vld [vmem:[%s1522_s0 + $0x8] sm:$0xff]   ;;  %v899_v7 = vld [vmem:[%s1522_s0 + $0x30] sm:$0xff]   ;;  %17 = vst.msk [vmem:[#allocation2] sm:$0xff] %vm16_vm1, %v997_v10  ;;  %v1069_v12 = vshrl.u32 %v256_v11, 7  ;;  %v1072_v14 = vand.u32 127, %v256_v11 }
   0x3   :  { %863 = vmatpush3.bf16.msra.mxu0 %v891_v0  ;;  %884 = vmatpush3.bf16.msra.mxu1 %v891_v0  ;;  %v894_v3 = vld [vmem:[%s1522_s0 + $0x20] sm:$0xff]   ;;  %v896_v5 = vld [vmem:[%s1522_s0 + $0x28] sm:$0xff]   ;;  %v898_v8 = vld [vmem:[%s1522_s0 + $0x18] sm:$0xff]   ;;  %18 = vst.msk [vmem:[#allocation2 + $0x8] sm:$0xff] %vm16_vm1, %v997_v10 }
   0x4   :  { %864 = vmatprep.subr.bf16.mxu0 %v892_v1  ;;  %883 = vmatprep.subr.bf16.mxu1 %v892_v1  ;;  %v900_v9 = vld [vmem:[%s1522_s0 + $0x38] sm:$0xff]   ;;  %19 = vst.msk [vmem:[#allocation2 + $0x10] sm:$0xff] %vm16_vm1, %v997_v10  ;;  %20 = vst.msk [vmem:[#allocation2 + $0x18] sm:$0xff] %vm16_vm1, %v997_v10  ;;  %v267_v13 = vadd.s32 80, %v1069_v12  ;;  %v259_v15 = vadd.s32 16, %v1069_v12  ;;  %vm310_vm3 = vcmp.ge.s32.totalorder %v1072_v14, 24  ;;  %vm294_vm7 = vcmp.eq.s32.totalorder %v1069_v12, %v1072_v14 }
   0x5   :  { %866 = vmatprep.mubr.msk.bf16.mxu0 %vm121_vm0, %v893_v2  ;;  %874 = vmatprep.mubr.msk.bf16.mxu1 %vm121_vm0, %v894_v3  ;;  %21 = vst.msk [vmem:[#allocation2 + $0x20] sm:$0xff] %vm16_vm1, %v997_v10  ;;  %22 = vst.msk [vmem:[#allocation2 + $0x28] sm:$0xff] %vm16_vm1, %v997_v10  ;;  %v260_v16 = vadd.s32 24, %v1069_v12  ;;  %v265_v17 = vadd.s32 64, %v1069_v12  ;;  %v268_v18 = vadd.s32 88, %v1069_v12  ;;  %v266_v27 = vadd.s32 72, %v1069_v12 }
   0x6   :  { %23 = vst.msk [vmem:[#allocation2 + $0x30] sm:$0xff] %vm16_vm1, %v997_v10  ;;  %24 = vst.msk [vmem:[#allocation2 + $0x38] sm:$0xff] %vm16_vm1, %v997_v10  ;;  %vm304_vm2 = vcmp.eq.s32.totalorder %v267_v13, %v1072_v14  ;;  %vm296_vm4 = vcmp.eq.s32.totalorder %v259_v15, %v1072_v14  ;;  %v258_v30 = vadd.s32 8, %v1069_v12  ;;  %v263_v31 = vadd.s32 48, %v1069_v12  ;;  %889 = vset.pattern.permute.xlu1 %v998_v57 }
   0x7   :  { %865 = vmatpush3.bf16.msra.mxu0 %v892_v1  ;;  %885 = vmatpush3.bf16.msra.mxu1 %v892_v1  ;;  %25 = vst.msk [vmem:[#allocation2 + $0x40] sm:$0xff] %vm16_vm1, %v997_v10  ;;  %26 = vst.msk [vmem:[#allocation2 + $0x48] sm:$0xff] %vm16_vm1, %v997_v10  ;;  %vm297_vm8 = vcmp.eq.s32.totalorder %v260_v16, %v1072_v14  ;;  %vm302_vm11 = vcmp.eq.s32.totalorder %v265_v17, %v1072_v14  ;;  %v264_v34 = vadd.s32 56, %v1069_v12 }
   0x8   :  { %28 = vst.msk [vmem:[#allocation2 + $0x58] sm:$0xff] %vm16_vm1, %v997_v10  ;;  %29 = vst.msk [vmem:[#allocation2 + $0x60] sm:$0xff] %vm16_vm1, %v997_v10  ;;  %vm305_vm12 = vcmp.eq.s32.totalorder %v268_v18, %v1072_v14  ;;  %vm303_vm15 = vcmp.eq.s32.totalorder %v266_v27, %v1072_v14  ;;  %v261_v37 = vadd.s32 32, %v1069_v12  ;;  %v272_v38 = vadd.s32 120, %v1069_v12  ;;  %890 = vset.pattern.permute.xlu0 %v998_v57  ;;  %v1217_v1 = vld [vmem:[#allocation2 + $0x50] sm:$0xff] }
   0x9   :  { %30 = vst.msk [vmem:[#allocation2 + $0x68] sm:$0xff] %vm16_vm1, %v997_v10  ;;  %31 = vst.msk [vmem:[#allocation2 + $0x70] sm:$0xff] %vm16_vm1, %v997_v10  ;;  %v269_v49 = vadd.s32 96, %v1069_v12  ;;  %v262_v52 = vadd.s32 40, %v1069_v12  ;;  %v271_v53 = vadd.s32 112, %v1069_v12  ;;  %v270_v54 = vadd.s32 104, %v1069_v12 }
   0xa   :  { %867 = vmatmul.mubr.msk.bf16.vlgmr.msra.gmra.mrb[0].mxu0 %vm121_vm0, %v895_v4  ;;  %875 = vmatmul.mubr.msk.bf16.vlgmr.msra.gmra.mrb[0].mxu1 %vm121_vm0, %v896_v5  ;;  %32 = vst.msk [vmem:[#allocation2 + $0x78] sm:$0xff] %vm16_vm1, %v997_v10  ;;  %vm321_vm5 = vmor %vm304_vm2, %vm310_vm3  ;;  %vm300_vm2 = vcmp.eq.s32.totalorder %v263_v31, %v1072_v14 }
   0xb   :  { %870 = vmatprep.mubr.msk.bf16.mxu0 %vm121_vm0, %v897_v6  ;;  %878 = vmatprep.mubr.msk.bf16.mxu1 %vm121_vm0, %v899_v7  ;;  %vm313_vm6 = vmor %vm296_vm4, %vm310_vm3  ;;  %35 = vst.msk [vmem:[#allocation3 + $0x10] sm:$0xff] %vm16_vm1, %v999_v62  ;;  %v1219_v2 = vld [vmem:[#allocation2 + $0x10] sm:$0xff]  ;;  %v1227_v7 = vld [vmem:[#allocation2] sm:$0xff] }
   0xc   :  { %vm311_vm9 = vmor %vm294_vm7, %vm310_vm3  ;;  %33 = vst.msk [vmem:[#allocation3] sm:$0xff] %vm16_vm1, %v999_v62 }
   0xd   :  { %vm314_vm10 = vmor %vm297_vm8, %vm310_vm3  ;;  %34 = vst.msk [vmem:[#allocation3 + $0x8] sm:$0xff] %vm16_vm1, %v999_v62 }
   0xe   :  { %vm319_vm13 = vmor %vm302_vm11, %vm310_vm3  ;;  %36 = vst.msk [vmem:[#allocation3 + $0x18] sm:$0xff] %vm16_vm1, %v999_v62  ;;  %v1246_v15 = vld [vmem:[#allocation2 + $0x40] sm:$0xff] }
   0xf   :  { %vm322_vm14 = vmor %vm305_vm12, %vm310_vm3  ;;  %37 = vst.msk [vmem:[#allocation3 + $0x20] sm:$0xff] %vm16_vm1, %v999_v62  ;;  %v1248_v16 = vld [vmem:[#allocation2 + $0x58] sm:$0xff]  ;;  %v1325_v60 = vld [vmem:[#allocation2 + $0x60] sm:$0xff] }
  0x10   :  { %vm320_vm4 = vmor %vm303_vm15, %vm310_vm3  ;;  %38 = vst.msk [vmem:[#allocation3 + $0x28] sm:$0xff] %vm16_vm1, %v999_v62 }
  0x11   :  { %vm317_vm7 = vmor %vm300_vm2, %vm310_vm3  ;;  %vm307_vm2 = vcmp.eq.s32.totalorder %v270_v54, %v1072_v14  ;;  %39 = vst.msk [vmem:[#allocation3 + $0x30] sm:$0xff] %vm16_vm1, %v999_v62 }
  0x12   :  { %871 = vmatmul.mubr.msk.bf16.gmra.mrb[4].mxu0 %vm121_vm0, %v898_v8  ;;  %879 = vmatmul.mubr.msk.bf16.gmra.mrb[4].mxu1 %vm121_vm0, %v900_v9  ;;  %vm295_vm0 = vcmp.eq.s32.totalorder %v258_v30, %v1072_v14  ;;  %40 = vst.msk [vmem:[#allocation3 + $0x38] sm:$0xff] %vm16_vm1, %v999_v62  ;;  %41 = vst.msk [vmem:[#allocation3 + $0x40] sm:$0xff] %vm16_vm1, %v999_v62  ;;  %v1229_v8 = vld [vmem:[#allocation2 + $0x18] sm:$0xff] }
  0x13   :  { %42 = vst.msk [vmem:[#allocation3 + $0x48] sm:$0xff] %vm16_vm1, %v999_v62  ;;  %43 = vst.msk [vmem:[#allocation3 + $0x50] sm:$0xff] %vm16_vm1, %v999_v62 }
  0x14   :  { %44 = vst.msk [vmem:[#allocation3 + $0x58] sm:$0xff] %vm16_vm1, %v999_v62  ;;  %45 = vst.msk [vmem:[#allocation3 + $0x60] sm:$0xff] %vm16_vm1, %v999_v62 }
  0x15   :  { %46 = vst.msk [vmem:[#allocation3 + $0x68] sm:$0xff] %vm16_vm1, %v999_v62  ;;  %47 = vst.msk [vmem:[#allocation3 + $0x70] sm:$0xff] %vm16_vm1, %v999_v62 }
  0x16   :  { %48 = vst.msk [vmem:[#allocation3 + $0x78] sm:$0xff] %vm16_vm1, %v999_v62  ;;  %v1327_v62 = vld [vmem:[#allocation2 + $0x28] sm:$0xff] }
  0xdd   :  { %v868_v19 = vpop.f32.mrb[0].mxu0  ;;  %v876_v20 = vpop.f32.mrb[0].mxu1 }
  0xde   :  { %v180_v21 = vpop.f32.mrb[1].mxu0  ;;  %v212_v22 = vpop.f32.mrb[1].mxu1  ;;  %v1088_v23 = vsel %vm321_vm5, -1e+30, %v876_v20  ;;  %v1090_v24 = vsel %vm313_vm6, -1e+30, %v868_v19  ;;  %vm301_vm5 = vcmp.eq.s32.totalorder %v264_v34, %v1072_v14  ;;  %vm312_vm6 = vmor %vm295_vm0, %vm310_vm3  ;;  %vm308_vm0 = vcmp.eq.s32.totalorder %v271_v53, %v1072_v14 }
  0xdf   :  { %414 = vmax.xlane.f32.xlu0 %v1088_v23  ;;  %v877_v25 = vpop.f32.mrb[2].mxu1  ;;  %398 = vmax.xlane.f32.xlu1 %v1090_v24  ;;  %v869_v26 = vpop.f32.mrb[2].mxu0  ;;  %v1103_v32 = vsel %vm311_vm9, -1e+30, %v180_v21  ;;  %v1121_v39 = vsel %vm319_vm13, -1e+30, %v212_v22  ;;  %vm318_vm8 = vmor %vm301_vm5, %vm310_vm3  ;;  %vm298_vm9 = vcmp.eq.s32.totalorder %v261_v37, %v1072_v14  ;;  %vm306_vm13 = vcmp.eq.s32.totalorder %v269_v49, %v1072_v14 }
  0xe0   :  { %v183_v28 = vpop.f32.mrb[3].mxu0  ;;  %v215_v29 = vpop.f32.mrb[3].mxu1  ;;  %v1105_v33 = vsel %vm314_vm10, -1e+30, %v869_v26  ;;  %v1123_v40 = vsel %vm322_vm14, -1e+30, %v877_v25  ;;  %vm309_vm10 = vcmp.eq.s32.totalorder %v272_v38, %v1072_v14  ;;  %vm315_vm11 = vmor %vm298_vm9, %vm310_vm3  ;;  %vm299_vm14 = vcmp.eq.s32.totalorder %v262_v52, %v1072_v14 }
  0xe1   :  { %v1137_v47 = vsel %vm320_vm4, -1e+30, %v215_v29  ;;  %v1139_v48 = vsel %vm312_vm6, -1e+30, %v183_v28  ;;  %vm326_vm12 = vmor %vm309_vm10, %vm310_vm3  ;;  %v1266_v25 = vld [vmem:[#allocation2 + $0x48] sm:$0xff] }
  0xe2   :  { %vm323_vm15 = vmor %vm306_vm13, %vm310_vm3  ;;  %v1268_v26 = vld [vmem:[#allocation2 + $0x8] sm:$0xff] }
  0xe3   :  { %394 = vmax.xlane.f32.xlu0 %v1103_v32  ;;  %400 = vmax.xlane.f32.xlu1 %v1105_v33  ;;  %vm316_vm4 = vmor %vm299_vm14, %vm310_vm3 }
  0xe4   :  { %vm1176_vm5 = vmor %vm308_vm0, %vm310_vm3 }
  0xe5   :  { %v872_v35 = vpop.f32.mrb[4].mxu0  ;;  %v1116_v36 = vpop.f32.mrb[4].mxu1  ;;  %vm1182_vm6 = vmor %vm307_vm2, %vm310_vm3 }
  0xe6   :  { %v196_v41 = vpop.f32.mrb[5].mxu0  ;;  %v228_v42 = vpop.f32.mrb[5].mxu1  ;;  %v1145_v50 = vsel %vm317_vm7, -1e+30, %v872_v35  ;;  %v1209_v63 = vsel %vm1176_vm5, -1e+30, %v1116_v36 }
  0xe7   :  { %410 = vmax.xlane.f32.xlu0 %v1121_v39  ;;  %416 = vmax.xlane.f32.xlu1 %v1123_v40  ;;  %v873_v43 = vpop.f32.mrb[6].mxu0  ;;  %v881_v44 = vpop.f32.mrb[6].mxu1  ;;  %v1159_v55 = vsel %vm315_vm11, -1e+30, %v196_v41  ;;  %v1172_v58 = vsel %vm323_vm15, -1e+30, %v228_v42 }
  0xe8   :  { %v199_v45 = vpop.f32.mrb[7].mxu0  ;;  %v231_v46 = vpop.f32.mrb[7].mxu1  ;;  %v1147_v51 = vsel %vm318_vm8, -1e+30, %v873_v43  ;;  %v1161_v56 = vsel %vm326_vm12, -1e+30, %v881_v44 }
  0xe9   :  { %v1186_v61 = vsel %vm316_vm4, -1e+30, %v199_v45  ;;  %v1213_v0 = vsel %vm1182_vm6, -1e+30, %v231_v46  ;;  %v1286_v35 = vld [vmem:[#allocation2 + $0x30] sm:$0xff]  ;;  %v1288_v36 = vld [vmem:[#allocation2 + $0x38] sm:$0xff] }
  0xea   :  { %v1306_v45 = vld [vmem:[#allocation2 + $0x20] sm:$0xff]  ;;  %v1308_v46 = vld [vmem:[#allocation2 + $0x78] sm:$0xff] }
  0xeb   :  { %412 = vmax.xlane.f32.xlu1 %v1137_v47  ;;  %396 = vmax.xlane.f32.xlu0 %v1139_v48 }
  0xef   :  { %406 = vmax.xlane.f32.xlu0 %v1145_v50  ;;  %408 = vmax.xlane.f32.xlu1 %v1147_v51 }
  0xf3   :  { %402 = vmax.xlane.f32.xlu0 %v1159_v55  ;;  %424 = vmax.xlane.f32.xlu1 %v1161_v56 }
  0xf7   :  { %418 = vmax.xlane.f32.xlu0 %v1172_v58  ;;  %404 = vmax.xlane.f32.xlu1 %v1186_v61 }
  0xfb   :  { %422 = vmax.xlane.f32.xlu0 %v1209_v63  ;;  %420 = vmax.xlane.f32.xlu1 %v1213_v0 }
 0x16c   :  { %v415_v3 = vpop.xlane.xlu0 %414  ;;  %v399_v4 = vpop.xlane.xlu1 %398 }
 0x16d   :  { %v1222_v5 = vmax.f32 %v1217_v1, %v415_v3  ;;  %v1225_v6 = vmax.f32 %v1219_v2, %v399_v4 }
 0x16f   :  { %725 = vst.msk [vmem:[#allocation2 + $0x50] sm:$0xff] %vm16_vm1, %v1222_v5  ;;  %v444_v10 = vsub.f32 %v1219_v2, %v1225_v6  ;;  %717 = vst.msk [vmem:[#allocation2 + $0x10] sm:$0xff] %vm16_vm1, %v1225_v6  ;;  %534 = vperm.xlu1 %889, %v1225_v6  }
 0x170   :  { %v395_v11 = vpop.xlane.xlu0 %394  ;;  %v401_v12 = vpop.xlane.xlu1 %400 }
 0x171   :  { %v1241_v13 = vmax.f32 %v1227_v7, %v395_v11  ;;  %v1244_v14 = vmax.f32 %v1229_v8, %v401_v12 }
 0x173   :  { %v442_v17 = vsub.f32 %v1227_v7, %v1241_v13  ;;  %715 = vst.msk [vmem:[#allocation2] sm:$0xff] %vm16_vm1, %v1241_v13  ;;  %718 = vst.msk [vmem:[#allocation2 + $0x18] sm:$0xff] %vm16_vm1, %v1244_v14  ;;  %524 = vperm.xlu0 %890, %v1241_v13   ;;  %574 = vperm.xlu1 %889, %v1222_v5  }
 0x174   :  { %v411_v19 = vpop.xlane.xlu0 %410  ;;  %v417_v20 = vpop.xlane.xlu1 %416 }
 0x175   :  { %v1261_v21 = vmax.f32 %v1246_v15, %v411_v19  ;;  %v1264_v22 = vmax.f32 %v1248_v16, %v417_v20 }
 0x177   :  { %723 = vst.msk [vmem:[#allocation2 + $0x40] sm:$0xff] %vm16_vm1, %v1261_v21  ;;  %726 = vst.msk [vmem:[#allocation2 + $0x58] sm:$0xff] %vm16_vm1, %v1264_v22  ;;  %579 = vperm.xlu0 %890, %v1264_v22   ;;  %564 = vperm.xlu1 %889, %v1261_v21  }
 0x178   :  { %v413_v29 = vpop.xlane.xlu1 %412  ;;  %v397_v30 = vpop.xlane.xlu0 %396 }
 0x179   :  { %v1281_v31 = vmax.f32 %v1266_v25, %v413_v29  ;;  %v1284_v34 = vmax.f32 %v1268_v26, %v397_v30  ;;  %v1344_v29 = vld [vmem:[#allocation2 + $0x70] sm:$0xff]  ;;  %v1346_v30 = vld [vmem:[#allocation2 + $0x68] sm:$0xff] }
 0x17b   :  { %724 = vst.msk [vmem:[#allocation2 + $0x48] sm:$0xff] %vm16_vm1, %v1281_v31  ;;  %716 = vst.msk [vmem:[#allocation2 + $0x8] sm:$0xff] %vm16_vm1, %v1284_v34  ;;  %569 = vperm.xlu0 %890, %v1281_v31   ;;  %539 = vperm.xlu1 %889, %v1244_v14   ;;  %v1531_v7 = vsub.f32 %v1268_v26, %v1284_v34  ;;  %v1534_v26 = vsub.f32 %v1266_v25, %v1281_v31 }
 0x17c   :  { %v407_v41 = vpop.xlane.xlu0 %406  ;;  %v409_v42 = vpop.xlane.xlu1 %408 }
 0x17d   :  { %v1301_v43 = vmax.f32 %v1286_v35, %v407_v41  ;;  %v1304_v44 = vmax.f32 %v1288_v36, %v409_v42  ;;  %v460_v13 = vmul.f32 1.442695, %v1531_v7 }
 0x17f   :  { %721 = vst.msk [vmem:[#allocation2 + $0x30] sm:$0xff] %vm16_vm1, %v1301_v43  ;;  %722 = vst.msk [vmem:[#allocation2 + $0x38] sm:$0xff] %vm16_vm1, %v1304_v44  ;;  %529 = vperm.xlu1 %889, %v1284_v34   ;;  %v476_v34 = vmul.f32 1.442695, %v1534_v26  ;;  %v736_v26 = vld [vmem:[#allocation2 + $0x10] sm:$0xff] }
 0x180   :  { %v403_v53 = vpop.xlane.xlu0 %402  ;;  %v425_v54 = vpop.xlane.xlu1 %424 }
 0x181   :  { %v1320_v57 = vmax.f32 %v1306_v45, %v403_v53  ;;  %v1323_v59 = vmax.f32 %v1308_v46, %v425_v54 }
 0x183   :  { %719 = vst.msk [vmem:[#allocation2 + $0x20] sm:$0xff] %vm16_vm1, %v1320_v57  ;;  %730 = vst.msk [vmem:[#allocation2 + $0x78] sm:$0xff] %vm16_vm1, %v1323_v59  ;;  %554 = vperm.xlu1 %889, %v1301_v43  }
 0x184   :  { %v419_v11 = vpop.xlane.xlu0 %418  ;;  %v405_v12 = vpop.xlane.xlu1 %404 }
 0x185   :  { %v1339_v19 = vmax.f32 %v1325_v60, %v419_v11  ;;  %v1342_v20 = vmax.f32 %v1327_v62, %v405_v12 }
 0x187   :  { %727 = vst.msk [vmem:[#allocation2 + $0x60] sm:$0xff] %vm16_vm1, %v1339_v19  ;;  %720 = vst.msk [vmem:[#allocation2 + $0x28] sm:$0xff] %vm16_vm1, %v1342_v20  ;;  %544 = vperm.xlu1 %889, %v1320_v57  }
 0x188   :  { %v423_v53 = vpop.xlane.xlu0 %422  ;;  %v421_v54 = vpop.xlane.xlu1 %420 }
 0x189   :  { %v1358_v11 = vmax.f32 %v1344_v29, %v423_v53  ;;  %v1361_v12 = vmax.f32 %v1346_v30, %v421_v54 }
 0x18b   :  { %729 = vst.msk [vmem:[#allocation2 + $0x70] sm:$0xff] %vm16_vm1, %v1358_v11  ;;  %728 = vst.msk [vmem:[#allocation2 + $0x68] sm:$0xff] %vm16_vm1, %v1361_v12  ;;  %584 = vperm.xlu1 %889, %v1339_v19   ;;  %589 = vperm.xlu0 %890, %v1361_v12  }
 0x18f   :  { %559 = vperm.xlu1 %889, %v1304_v44   ;;  %599 = vperm.xlu0 %890, %v1323_v59  }
 0x193   :  { %549 = vperm.xlu1 %889, %v1342_v20  }
 0x197   :  { %594 = vperm.xlu1 %889, %v1358_v11  }
 0x1ee   :  { %v535_v53 = vpop.permute.xlu1 %534 }
 0x1ef   :  { %v604_v54 = vsub.f32 %v1090_v24, %v535_v53 }
 0x1f1   :  { %v622_v4 = vmul.f32 1.442695, %v604_v54 }
 0x1f2   :  { %v525_v42 = vpop.permute.xlu0 %524  ;;  %v575_v52 = vpop.permute.xlu1 %574 }
 0x1f3   :  { %901 = vpow2.f32 %v622_v4  ;;  %v602_v41 = vsub.f32 %v1103_v32, %v525_v42  ;;  %v612_v3 = vsub.f32 %v1088_v23, %v575_v52 }
 0x1f5   :  { %v618_v37 = vmul.f32 1.442695, %v602_v41  ;;  %v638_v49 = vmul.f32 1.442695, %v612_v3 }
 0x1f6   :  { %v565_v28 = vpop.permute.xlu1 %564  ;;  %v580_v38 = vpop.permute.xlu0 %579 }
 0x1f7   :  { %903 = vpow2.f32 %v618_v37  ;;  %v610_v18 = vsub.f32 %v1121_v39, %v565_v28  ;;  %v613_v53 = vsub.f32 %v1123_v40, %v580_v38 }
 0x1f8   :  { %905 = vpow2.f32 %v638_v49 }
 0x1f9   :  { %v634_v27 = vmul.f32 1.442695, %v610_v18  ;;  %v640_v3 = vmul.f32 1.442695, %v613_v53 }
 0x1fa   :  { %v540_v9 = vpop.permute.xlu1 %539  ;;  %v570_v54 = vpop.permute.xlu0 %569 }
 0x1fb   :  { %v605_v24 = vsub.f32 %v1105_v33, %v540_v9  ;;  %907 = vpow2.f32 %v634_v27  ;;  %v611_v37 = vsub.f32 %v1137_v47, %v570_v54 }
 0x1fd   :  { %v902_v4 = vpop.eup %901  ;;  %v624_v32 = vmul.f32 1.442695, %v605_v24  ;;  %v636_v40 = vmul.f32 1.442695, %v611_v37 }
 0x1fe   :  { %654 = vadd.xlane.f32.xlu0 %v902_v4  ;;  %v530_v23 = vpop.permute.xlu1 %529 }
 0x1ff   :  { %v603_v52 = vsub.f32 %v1139_v48, %v530_v23  ;;  %909 = vpow2.f32 %v624_v32 }
 0x201   :  { %v904_v39 = vpop.eup %903  ;;  %v620_v28 = vmul.f32 1.442695, %v603_v52 }
 0x202   :  { %v906_v18 = vpop.eup %905  ;;  %650 = vadd.xlane.f32.xlu1 %v904_v39  ;;  %v555_v49 = vpop.permute.xlu1 %554 }
 0x203   :  { %911 = vpow2.f32 %v620_v28  ;;  %670 = vadd.xlane.f32.xlu0 %v906_v18  ;;  %v608_v33 = vsub.f32 %v1145_v50, %v555_v49 }
 0x204   :  { %913 = vpow2.f32 %v640_v3 }
 0x205   :  { %v630_v9 = vmul.f32 1.442695, %v608_v33  ;;  %v908_v27 = vpop.eup %907 }
 0x206   :  { %v545_v38 = vpop.permute.xlu1 %544 }
 0x207   :  { %915 = vpow2.f32 %v630_v9  ;;  %666 = vadd.xlane.f32.xlu0 %v908_v27  ;;  %v606_v48 = vsub.f32 %v1159_v55, %v545_v38 }
 0x208   :  { %917 = vpow2.f32 %v636_v40 }
 0x209   :  { %v626_v47 = vmul.f32 1.442695, %v606_v48  ;;  %v910_v41 = vpop.eup %909 }
 0x20a   :  { %v585_v42 = vpop.permute.xlu1 %584  ;;  %656 = vadd.xlane.f32.xlu1 %v910_v41  ;;  %v590_v32 = vpop.permute.xlu0 %589 }
 0x20b   :  { %919 = vpow2.f32 %v626_v47  ;;  %v614_v24 = vsub.f32 %v1172_v58, %v585_v42  ;;  %v615_v58 = vsub.f32 %v1213_v0, %v590_v32 }
 0x20d   :  { %v912_v53 = vpop.eup %911  ;;  %v642_v4 = vmul.f32 1.442695, %v614_v24  ;;  %v644_v40 = vmul.f32 1.442695, %v615_v58  ;;  %v1528_v24 = vsub.f32 %v1217_v1, %v1222_v5  ;;  %v1532_v1 = vsub.f32 %v1248_v16, %v1264_v22 }
 0x20e   :  { %v914_v50 = vpop.eup %913  ;;  %652 = vadd.xlane.f32.xlu0 %v912_v53  ;;  %v560_v54 = vpop.permute.xlu1 %559 }
 0x20f   :  { %672 = vadd.xlane.f32.xlu1 %v914_v50  ;;  %v609_v23 = vsub.f32 %v1147_v51, %v560_v54  ;;  %921 = vpow2.f32 %v642_v4  ;;  %v600_v18 = vpop.permute.xlu0 %599  ;;  %v478_v53 = vmul.f32 1.442695, %v1528_v24  ;;  %v1529_v4 = vsub.f32 %v1246_v15, %v1261_v21  ;;  %v490_v21 = vld [vmem:[#allocation3] sm:$0xff] }
 0x210   :  { %v617_v9 = vsub.f32 %v1161_v56, %v600_v18  ;;  %v462_v56 = vmul.f32 1.442695, %v444_v10  ;;  %v1530_v54 = vsub.f32 %v1229_v8, %v1244_v14  ;;  %v492_v10 = vld [vmem:[#allocation3 + $0x10] sm:$0xff]  ;;  %v480_v5 = vmul.f32 1.442695, %v1532_v1 }
 0x211   :  { %v916_v52 = vpop.eup %915  ;;  %v632_v55 = vmul.f32 1.442695, %v609_v23  ;;  %v474_v50 = vmul.f32 1.442695, %v1529_v4  ;;  %v500_v8 = vld [vmem:[#allocation3 + $0x50] sm:$0xff]  ;;  %v1533_v14 = vsub.f32 %v1286_v35, %v1301_v43  ;;  %v1535_v18 = vsub.f32 %v1306_v45, %v1320_v57 }
 0x212   :  { %v918_v3 = vpop.eup %917  ;;  %662 = vadd.xlane.f32.xlu0 %v916_v52  ;;  %v550_v37 = vpop.permute.xlu1 %549  ;;  %v464_v2 = vmul.f32 1.442695, %v1530_v54  ;;  %v496_v4 = vld [vmem:[#allocation3 + $0x30] sm:$0xff] }
 0x213   :  { %668 = vadd.xlane.f32.xlu1 %v918_v3  ;;  %v607_v39 = vsub.f32 %v1186_v61, %v550_v37  ;;  %923 = vpow2.f32 %v632_v55  ;;  %v648_v61 = vmul.f32 1.442695, %v617_v9  ;;  %v470_v55 = vmul.f32 1.442695, %v1533_v14 }
 0x214   :  { %v466_v35 = vmul.f32 1.442695, %v1535_v18 }
 0x215   :  { %v920_v28 = vpop.eup %919  ;;  %v628_v49 = vmul.f32 1.442695, %v607_v39 }
 0x216   :  { %658 = vadd.xlane.f32.xlu0 %v920_v28  ;;  %v595_v33 = vpop.permute.xlu1 %594  ;;  %v498_v28 = vld [vmem:[#allocation3 + $0x40] sm:$0xff] }
 0x217   :  { %925 = vpow2.f32 %v628_v49  ;;  %v616_v51 = vsub.f32 %v1209_v63, %v595_v33  ;;  %v458_v63 = vmul.f32 1.442695, %v442_v17  ;;  %v493_v33 = vld [vmem:[#allocation3 + $0x18] sm:$0xff] }
 0x219   :  { %v646_v27 = vmul.f32 1.442695, %v616_v51  ;;  %v922_v38 = vpop.eup %921  ;;  %v1536_v51 = vsub.f32 %v1325_v60, %v1339_v19 }
 0x21a   :  { %674 = vadd.xlane.f32.xlu0 %v922_v38  ;;  %v491_v38 = vld [vmem:[#allocation3 + $0x8] sm:$0xff] }
 0x21b   :  { %927 = vpow2.f32 %v646_v27 }
 0x21c   :  { %929 = vpow2.f32 %v644_v40  ;;  %v482_v40 = vmul.f32 1.442695, %v1536_v51 }
 0x21d   :  { %v924_v48 = vpop.eup %923  ;;  %931 = vpow2.f32 %v648_v61 }
 0x21e   :  { %664 = vadd.xlane.f32.xlu1 %v924_v48  ;;  %933 = vpow2.f32 %v462_v56 }
 0x21f   :  { %935 = vpow2.f32 %v458_v63 }
 0x220   :  { %937 = vpow2.f32 %v478_v53 }
 0x221   :  { %v926_v0 = vpop.eup %925  ;;  %939 = vpow2.f32 %v474_v50 }
 0x222   :  { %660 = vadd.xlane.f32.xlu1 %v926_v0  ;;  %941 = vpow2.f32 %v464_v2  ;;  %v501_v0 = vld [vmem:[#allocation3 + $0x58] sm:$0xff] }
 0x223   :  { %943 = vpow2.f32 %v460_v13 }
 0x224   :  { %945 = vpow2.f32 %v480_v5 }
 0x225   :  { %v928_v47 = vpop.eup %927  ;;  %947 = vpow2.f32 %v470_v55 }
 0x226   :  { %v930_v41 = vpop.eup %929  ;;  %678 = vadd.xlane.f32.xlu0 %v928_v47  ;;  %949 = vpow2.f32 %v476_v34 }
 0x227   :  { %676 = vadd.xlane.f32.xlu1 %v930_v41  ;;  %v932_v42 = vpop.eup %931  ;;  %951 = vpow2.f32 %v466_v35  ;;  %v734_v35 = vld [vmem:[#allocation2] sm:$0xff] }
 0x228   :  { %v934_v6 = vpop.eup %933 }
 0x229   :  { %v508_v17 = vmul.f32 %v934_v6, %v492_v10  ;;  %v936_v32 = vpop.eup %935  ;;  %v499_v6 = vld [vmem:[#allocation3 + $0x48] sm:$0xff] }
 0x22a   :  { %v938_v23 = vpop.eup %937  ;;  %v506_v16 = vmul.f32 %v936_v32, %v490_v21  ;;  %v494_v32 = vld [vmem:[#allocation3 + $0x20] sm:$0xff]  ;;  %v1539_v21 = vsub.f32 %v1344_v29, %v1358_v11 }
 0x22b   :  { %680 = vadd.xlane.f32.xlu1 %v932_v42  ;;  %v516_v22 = vmul.f32 %v938_v23, %v500_v8  ;;  %v940_v37 = vpop.eup %939  ;;  %v1537_v42 = vsub.f32 %v1288_v36, %v1304_v44  ;;  %v1538_v36 = vsub.f32 %v1327_v62, %v1342_v20  ;;  %v1540_v62 = vsub.f32 %v1346_v30, %v1361_v12 }
 0x22c   :  { %v514_v25 = vmul.f32 %v940_v37, %v498_v28  ;;  %v942_v31 = vpop.eup %941  ;;  %v486_v23 = vmul.f32 1.442695, %v1539_v21  ;;  %v1541_v12 = vsub.f32 %v1308_v46, %v1323_v59  ;;  %v745_v21 = vld [vmem:[#allocation2 + $0x58] sm:$0xff] }
 0x22d   :  { %v944_v45 = vpop.eup %943  ;;  %v509_v57 = vmul.f32 %v942_v31, %v493_v33  ;;  %v472_v56 = vmul.f32 1.442695, %v1537_v42  ;;  %v468_v44 = vmul.f32 1.442695, %v1538_v36  ;;  %v484_v20 = vmul.f32 1.442695, %v1540_v62 }
 0x22e   :  { %v946_v61 = vpop.eup %945  ;;  %v507_v19 = vmul.f32 %v944_v45, %v491_v38  ;;  %v744_v31 = vld [vmem:[#allocation2 + $0x50] sm:$0xff]  ;;  %v495_v42 = vld [vmem:[#allocation3 + $0x28] sm:$0xff] }
 0x22f   :  { %v948_v63 = vpop.eup %947  ;;  %v517_v53 = vmul.f32 %v946_v61, %v501_v0  ;;  %v742_v61 = vld [vmem:[#allocation2 + $0x40] sm:$0xff]  ;;  %v503_v36 = vld [vmem:[#allocation3 + $0x68] sm:$0xff] }
 0x230   :  { %v950_v50 = vpop.eup %949  ;;  %v512_v13 = vmul.f32 %v948_v63, %v496_v4  ;;  %v737_v4 = vld [vmem:[#allocation2 + $0x18] sm:$0xff] }
 0x231   :  { %v952_v1 = vpop.eup %951 }
 0x28b   :  { %v655_v15 = vpop.xlane.xlu0 %654 }
 0x28c   :  { %v684_v52 = vadd.f32 %v655_v15, %v508_v17  ;;  %v515_v17 = vmul.f32 %v950_v50, %v499_v6 }
 0x28e   :  { %701 = vst.msk [vmem:[#allocation3 + $0x10] sm:$0xff] %vm16_vm1, %v684_v52 }
 0x28f   :  { %v651_v3 = vpop.xlane.xlu1 %650 }
 0x290   :  { %v671_v39 = vpop.xlane.xlu0 %670  ;;  %v682_v58 = vadd.f32 %v651_v3, %v506_v16  ;;  %v510_v16 = vmul.f32 %v952_v1, %v494_v32  ;;  %v735_v1 = vld [vmem:[#allocation2 + $0x8] sm:$0xff] }
 0x291   :  { %v692_v43 = vadd.f32 %v671_v39, %v516_v22  ;;  %v502_v39 = vld [vmem:[#allocation3 + $0x60] sm:$0xff] }
 0x292   :  { %699 = vst.msk [vmem:[#allocation3] sm:$0xff] %vm16_vm1, %v682_v58  ;;  %v488_v58 = vmul.f32 1.442695, %v1541_v12 }
 0x293   :  { %709 = vst.msk [vmem:[#allocation3 + $0x50] sm:$0xff] %vm16_vm1, %v692_v43 }
 0x294   :  { %v667_v49 = vpop.xlane.xlu0 %666 }
 0x295   :  { %v752_v9 = vld [vmem:[#allocation3 + $0x10] sm:$0xff]  ;;  %v690_v27 = vadd.f32 %v667_v49, %v514_v25 }
 0x296   :  { %953 = vlog2.f32 %v752_v9 }
 0x297   :  { %707 = vst.msk [vmem:[#allocation3 + $0x40] sm:$0xff] %vm16_vm1, %v690_v27  ;;  %v657_v48 = vpop.xlane.xlu1 %656  ;;  %955 = vpow2.f32 %v482_v40  ;;  %v497_v40 = vld [vmem:[#allocation3 + $0x38] sm:$0xff] }
 0x298   :  { %v685_v41 = vadd.f32 %v657_v48, %v509_v57 }
 0x299   :  { %v750_v47 = vld [vmem:[#allocation3] sm:$0xff] }
 0x29a   :  { %v760_v60 = vld [vmem:[#allocation3 + $0x50] sm:$0xff]  ;;  %957 = vlog2.f32 %v750_v47  ;;  %702 = vst.msk [vmem:[#allocation3 + $0x18] sm:$0xff] %vm16_vm1, %v685_v41 }
 0x29b   :  { %959 = vlog2.f32 %v760_v60  ;;  %v653_v24 = vpop.xlane.xlu0 %652 }
 0x29c   :  { %v683_v54 = vadd.f32 %v653_v24, %v507_v19  ;;  %v673_v2 = vpop.xlane.xlu1 %672  ;;  %961 = vpow2.f32 %v472_v56 }
 0x29d   :  { %v693_v10 = vadd.f32 %v673_v2, %v517_v53 }
 0x29e   :  { %v758_v7 = vld [vmem:[#allocation3 + $0x40] sm:$0xff]  ;;  %700 = vst.msk [vmem:[#allocation3 + $0x8] sm:$0xff] %vm16_vm1, %v683_v54  ;;  %v504_v54 = vld [vmem:[#allocation3 + $0x70] sm:$0xff] }
 0x29f   :  { %963 = vlog2.f32 %v758_v7  ;;  %710 = vst.msk [vmem:[#allocation3 + $0x58] sm:$0xff] %vm16_vm1, %v693_v10  ;;  %v663_v5 = vpop.xlane.xlu0 %662 }
 0x2a0   :  { %v954_v15 = vpop.eup %953  ;;  %v688_v52 = vadd.f32 %v663_v5, %v512_v13  ;;  %v669_v8 = vpop.xlane.xlu1 %668  ;;  %965 = vpow2.f32 %v468_v44 }
 0x2a1   :  { %v771_v14 = vmul.f32 0.6931472, %v954_v15  ;;  %v691_v55 = vadd.f32 %v669_v8, %v515_v17  ;;  %v753_v34 = vld [vmem:[#allocation3 + $0x18] sm:$0xff]  ;;  %v956_v22 = vpop.eup %955 }
 0x2a2   :  { %705 = vst.msk [vmem:[#allocation3 + $0x30] sm:$0xff] %vm16_vm1, %v688_v52  ;;  %967 = vlog2.f32 %v753_v34  ;;  %v518_v33 = vmul.f32 %v956_v22, %v502_v39 }
 0x2a3   :  { %v800_v3 = vadd.f32 %v771_v14, %v736_v26  ;;  %708 = vst.msk [vmem:[#allocation3 + $0x48] sm:$0xff] %vm16_vm1, %v691_v55  ;;  %v659_v29 = vpop.xlane.xlu0 %658  ;;  %969 = vpow2.f32 %v486_v23  ;;  %v505_v26 = vld [vmem:[#allocation3 + $0x78] sm:$0xff] }
 0x2a4   :  { %v958_v11 = vpop.eup %957  ;;  %v686_v37 = vadd.f32 %v659_v29, %v510_v16  ;;  %971 = vpow2.f32 %v484_v20 }
 0x2a5   :  { %v960_v30 = vpop.eup %959  ;;  %816 = vst.msk [vmem:[%s1523_s2 + $0x10] sm:$0xff] %vm16_vm1, %v800_v3  ;;  %v767_v28 = vmul.f32 0.6931472, %v958_v11  ;;  %v751_v18 = vld [vmem:[#allocation3 + $0x8] sm:$0xff]  ;;  %v740_v3 = vld [vmem:[#allocation2 + $0x30] sm:$0xff] }
 0x2a6   :  { %v787_v43 = vmul.f32 0.6931472, %v960_v30  ;;  %973 = vlog2.f32 %v751_v18  ;;  %v761_v25 = vld [vmem:[#allocation3 + $0x58] sm:$0xff]  ;;  %703 = vst.msk [vmem:[#allocation3 + $0x20] sm:$0xff] %vm16_vm1, %v686_v37  ;;  %v962_v46 = vpop.eup %961  ;;  %v743_v37 = vld [vmem:[#allocation2 + $0x48] sm:$0xff] }
 0x2a7   :  { %v798_v49 = vadd.f32 %v767_v28, %v734_v35  ;;  %975 = vlog2.f32 %v761_v25  ;;  %v675_v51 = vpop.xlane.xlu0 %674  ;;  %v513_v48 = vmul.f32 %v962_v46, %v497_v40 }
 0x2a8   :  { %v808_v59 = vadd.f32 %v787_v43, %v744_v31  ;;  %977 = vpow2.f32 %v488_v58  ;;  %v694_v45 = vadd.f32 %v675_v51, %v518_v33  ;;  %v738_v43 = vld [vmem:[#allocation2 + $0x20] sm:$0xff] }
 0x2a9   :  { %v964_v9 = vpop.eup %963  ;;  %814 = vst.msk [vmem:[%s1523_s2] sm:$0xff] %vm16_vm1, %v798_v49  ;;  %v756_v27 = vld [vmem:[#allocation3 + $0x30] sm:$0xff]  ;;  %v746_v51 = vld [vmem:[#allocation2 + $0x60] sm:$0xff] }
 0x2aa   :  { %824 = vst.msk [vmem:[%s1523_s2 + $0x50] sm:$0xff] %vm16_vm1, %v808_v59  ;;  %v783_v57 = vmul.f32 0.6931472, %v964_v9  ;;  %979 = vlog2.f32 %v756_v27  ;;  %v759_v38 = vld [vmem:[#allocation3 + $0x48] sm:$0xff]  ;;  %711 = vst.msk [vmem:[#allocation3 + $0x60] sm:$0xff] %vm16_vm1, %v694_v45  ;;  %v966_v0 = vpop.eup %965 }
 0x2ab   :  { %981 = vlog2.f32 %v759_v38  ;;  %v665_v41 = vpop.xlane.xlu1 %664  ;;  %v511_v50 = vmul.f32 %v966_v0, %v495_v42  ;;  %v739_v0 = vld [vmem:[#allocation2 + $0x28] sm:$0xff] }
 0x2ac   :  { %v806_v47 = vadd.f32 %v783_v57, %v742_v61  ;;  %v968_v56 = vpop.eup %967  ;;  %v689_v19 = vadd.f32 %v665_v41, %v513_v48  ;;  %v741_v57 = vld [vmem:[#allocation2 + $0x38] sm:$0xff] }
 0x2ad   :  { %v754_v60 = vld [vmem:[#allocation3 + $0x20] sm:$0xff]  ;;  %v970_v63 = vpop.eup %969  ;;  %v773_v24 = vmul.f32 0.6931472, %v968_v56 }
 0x2ae   :  { %822 = vst.msk [vmem:[%s1523_s2 + $0x40] sm:$0xff] %vm16_vm1, %v806_v47  ;;  %983 = vlog2.f32 %v754_v60  ;;  %v972_v53 = vpop.eup %971  ;;  %706 = vst.msk [vmem:[#allocation3 + $0x38] sm:$0xff] %vm16_vm1, %v689_v19  ;;  %v520_v32 = vmul.f32 %v970_v63, %v504_v54  ;;  %v748_v60 = vld [vmem:[#allocation2 + $0x70] sm:$0xff]  ;;  %v747_v63 = vld [vmem:[#allocation2 + $0x68] sm:$0xff] }
 0x2af   :  { %v801_v6 = vadd.f32 %v773_v24, %v737_v4  ;;  %v661_v10 = vpop.xlane.xlu1 %660  ;;  %v519_v8 = vmul.f32 %v972_v53, %v503_v36  ;;  %v749_v54 = vld [vmem:[#allocation2 + $0x78] sm:$0xff] }
 0x2b0   :  { %v974_v2 = vpop.eup %973  ;;  %v687_v13 = vadd.f32 %v661_v10, %v511_v50 }
 0x2b1   :  { %v976_v44 = vpop.eup %975  ;;  %v769_v7 = vmul.f32 0.6931472, %v974_v2  ;;  %817 = vst.msk [vmem:[%s1523_s2 + $0x18] sm:$0xff] %vm16_vm1, %v801_v6  ;;  %v762_v17 = vld [vmem:[#allocation3 + $0x60] sm:$0xff] }
 0x2b2   :  { %v789_v5 = vmul.f32 0.6931472, %v976_v44  ;;  %v978_v15 = vpop.eup %977  ;;  %985 = vlog2.f32 %v762_v17  ;;  %704 = vst.msk [vmem:[#allocation3 + $0x28] sm:$0xff] %vm16_vm1, %v687_v13 }
 0x2b3   :  { %v799_v23 = vadd.f32 %v769_v7, %v735_v1  ;;  %v679_v52 = vpop.xlane.xlu0 %678  ;;  %v521_v30 = vmul.f32 %v978_v15, %v505_v26 }
 0x2b4   :  { %v980_v62 = vpop.eup %979  ;;  %v809_v20 = vadd.f32 %v789_v5, %v745_v21  ;;  %v696_v14 = vadd.f32 %v679_v52, %v520_v32  ;;  %v677_v55 = vpop.xlane.xlu1 %676 }
 0x2b5   :  { %v982_v34 = vpop.eup %981  ;;  %815 = vst.msk [vmem:[%s1523_s2 + $0x8] sm:$0xff] %vm16_vm1, %v799_v23  ;;  %v779_v16 = vmul.f32 0.6931472, %v980_v62  ;;  %v695_v22 = vadd.f32 %v677_v55, %v519_v8  ;;  %v757_v11 = vld [vmem:[#allocation3 + $0x38] sm:$0xff] }
 0x2b6   :  { %825 = vst.msk [vmem:[%s1523_s2 + $0x58] sm:$0xff] %vm16_vm1, %v809_v20  ;;  %v785_v29 = vmul.f32 0.6931472, %v982_v34  ;;  %713 = vst.msk [vmem:[#allocation3 + $0x70] sm:$0xff] %vm16_vm1, %v696_v14  ;;  %987 = vlog2.f32 %v757_v11 }
 0x2b7   :  { %v804_v39 = vadd.f32 %v779_v16, %v740_v3  ;;  %712 = vst.msk [vmem:[#allocation3 + $0x68] sm:$0xff] %vm16_vm1, %v695_v22 }
 0x2b8   :  { %v984_v12 = vpop.eup %983  ;;  %v807_v58 = vadd.f32 %v785_v29, %v743_v37  ;;  %v681_v28 = vpop.xlane.xlu1 %680 }
 0x2b9   :  { %820 = vst.msk [vmem:[%s1523_s2 + $0x30] sm:$0xff] %vm16_vm1, %v804_v39  ;;  %v775_v18 = vmul.f32 0.6931472, %v984_v12  ;;  %v697_v35 = vadd.f32 %v681_v28, %v521_v30  ;;  %v755_v25 = vld [vmem:[#allocation3 + $0x28] sm:$0xff] }
 0x2ba   :  { %823 = vst.msk [vmem:[%s1523_s2 + $0x48] sm:$0xff] %vm16_vm1, %v807_v58  ;;  %989 = vlog2.f32 %v755_v25 }
 0x2bb   :  { %v802_v31 = vadd.f32 %v775_v18, %v738_v43  ;;  %714 = vst.msk [vmem:[#allocation3 + $0x78] sm:$0xff] %vm16_vm1, %v697_v35 }
 0x2bc   :  { %v986_v49 = vpop.eup %985 }
 0x2bd   :  { %818 = vst.msk [vmem:[%s1523_s2 + $0x20] sm:$0xff] %vm16_vm1, %v802_v31  ;;  %v764_v33 = vld [vmem:[#allocation3 + $0x70] sm:$0xff]  ;;  %v791_v46 = vmul.f32 0.6931472, %v986_v49 }
 0x2be   :  { %991 = vlog2.f32 %v764_v33  ;;  %v763_v59 = vld [vmem:[#allocation3 + $0x68] sm:$0xff] }
 0x2bf   :  { %993 = vlog2.f32 %v763_v59  ;;  %v810_v40 = vadd.f32 %v791_v46, %v746_v51 }
 0x2c0   :  { %v988_v9 = vpop.eup %987 }
 0x2c1   :  { %826 = vst.msk [vmem:[%s1523_s2 + $0x60] sm:$0xff] %vm16_vm1, %v810_v40  ;;  %v781_v27 = vmul.f32 0.6931472, %v988_v9 }
 0x2c2   :  { %v765_v45 = vld [vmem:[#allocation3 + $0x78] sm:$0xff] }
 0x2c3   :  { %995 = vlog2.f32 %v765_v45  ;;  %v805_v38 = vadd.f32 %v781_v27, %v741_v57 }
 0x2c4   :  { %v990_v61 = vpop.eup %989 }
 0x2c5   :  { %821 = vst.msk [vmem:[%s1523_s2 + $0x38] sm:$0xff] %vm16_vm1, %v805_v38  ;;  %v777_v48 = vmul.f32 0.6931472, %v990_v61 }
 0x2c7   :  { %v803_v41 = vadd.f32 %v777_v48, %v739_v0 }
 0x2c8   :  { %v992_v47 = vpop.eup %991 }
 0x2c9   :  { %v994_v42 = vpop.eup %993  ;;  %v795_v56 = vmul.f32 0.6931472, %v992_v47  ;;  %819 = vst.msk [vmem:[%s1523_s2 + $0x28] sm:$0xff] %vm16_vm1, %v803_v41 }
 0x2ca   :  { %v793_v19 = vmul.f32 0.6931472, %v994_v42 }
 0x2cb   :  { %v812_v24 = vadd.f32 %v795_v56, %v748_v60 }
 0x2cc   :  { %v811_v53 = vadd.f32 %v793_v19, %v747_v63 }
 0x2cd   :  { %v996_v4 = vpop.eup %995  ;;  %828 = vst.msk [vmem:[%s1523_s2 + $0x70] sm:$0xff] %vm16_vm1, %v812_v24 }
 0x2ce   :  { %827 = vst.msk [vmem:[%s1523_s2 + $0x68] sm:$0xff] %vm16_vm1, %v811_v53  ;;  %v797_v50 = vmul.f32 0.6931472, %v996_v4 }
 0x2d0   :  { %v813_v2 = vadd.f32 %v797_v50, %v749_v54 }
 0x2d2   :  { %829 = vst.msk [vmem:[%s1523_s2 + $0x78] sm:$0xff] %vm16_vm1, %v813_v2 }

</bundles_post_ra>
